<compile_context>
chip_gen: v5e
topology: v5e:2x2
jax: 0.10.0
libtpu: 0.0.40
codegen_flags: <defaults>
</compile_context>

<pallas_src>
import functools
import math

import jax
import jax.numpy as jnp
import numpy as np
from jax.experimental import pallas as pl
from jax.experimental.pallas import tpu as pltpu


def _round_up(x, m):
    return (x + m - 1) // m * m


def _biaffine_kernel(f_ref, tT_ref, u_ref, o_ref, *, G, Tp):
    # f_ref:  (1, tile_f, Fp)          from block (bias col folded into padding)
    # tT_ref: (1, Tp, Lt_pad)          to_tensor pre-transposed in the wrapper
    # u_ref:  (1, Fp, G*Tp)            G out-channels fused along the lane dim
    # o_ref:  (1, G, tile_f, Lt_pad)   channel-major, lane-dense output block
    f = f_ref[0]
    tT = tT_ref[0]
    u = u_ref[0]
    # Fused first GEMM: lane dim G*Tp (>=512 when G>=4) -> good MXU fill.
    affine = jnp.dot(f, u, preferred_element_type=jnp.float32)  # (tile_f, G*Tp) f32
    for g in range(G):  # static, unrolled; slices are 128-aligned in the lane dim
        a_g = affine[:, g * Tp:(g + 1) * Tp].astype(tT.dtype)
        o_ref[0, g] = jnp.dot(a_g, tT, preferred_element_type=jnp.float32)


def biaffine_forward(from_tensor, to_tensor, U, out_size, bias=(True, True),
                     *, compute_dtype=jnp.bfloat16, channels_last=False):
    """Pallas implementation of Biaffine.forward.

    Returns (B, out_size, from_len, to_len) by default (kernel-native layout);
    pass channels_last=True for the PyTorch (B, from_len, to_len, out_size).
    """
    B, from_len, from_size = from_tensor.shape
    _, to_len, to_size = to_tensor.shape
    F1 = from_size + int(bias[0])
    T1 = to_size + int(bias[1])

    # Pad contraction dims to full 128-wide MXU passes; pad output lane dim.
    Fp = _round_up(F1, 128)
    Tp = _round_up(T1, 128)
    Lt_pad = _round_up(to_len, 128)

    # Tile from_len (sublane dim only needs a multiple of 8); tile for v7x VMEM.
    Lf8 = _round_up(from_len, 8)
    tile_f = Lf8 if Lf8 <= 512 else 256
    Lf_pad = _round_up(Lf8, tile_f)
    nf = Lf_pad // tile_f

    itemsize = jnp.dtype(compute_dtype).itemsize

    # Fuse G out-channels per grid step, bounded by a conservative VMEM budget
    # for the double-buffered U slab + output slab (fits v7x's 64 MiB).
    budget = 8 * 1024 * 1024
    G = 1
    for cand in range(out_size, 0, -1):
        u_b = Fp * cand * Tp * itemsize
        o_b = cand * tile_f * Lt_pad * 4
        if 2 * (u_b + o_b) <= budget:
            G = cand
            break
    n_og = -(-out_size // G)
    OG_pad = n_og * G

    # --- Build zero-padded operands (bias "ones" folded into the padding). ---
    f_pad = jnp.zeros((B, Lf_pad, Fp), compute_dtype)
    f_pad = f_pad.at[:, :from_len, :from_size].set(from_tensor.astype(compute_dtype))
    if bias[0]:
        f_pad = f_pad.at[:, :from_len, from_size].set(jnp.asarray(1, compute_dtype))

    # Pre-transposed to_tensor: (B, Tp, Lt_pad); no in-kernel transpose needed.
    tT_pad = jnp.zeros((B, Tp, Lt_pad), compute_dtype)
    tT_pad = tT_pad.at[:, :to_size, :to_len].set(
        jnp.swapaxes(to_tensor, 1, 2).astype(compute_dtype))
    if bias[1]:
        tT_pad = tT_pad.at[:, to_size, :to_len].set(jnp.asarray(1, compute_dtype))

    # U: (F1, out*T1) -> (out, F1, T1) -> padded -> (n_og, Fp, G*Tp) fused slabs
    # so U_fused[og, :, g*Tp:(g+1)*Tp] is the (Fp, Tp) slab of channel og*G+g.
    U3 = jnp.transpose(U.reshape(F1, out_size, T1), (1, 0, 2))
    U_pad = jnp.zeros((OG_pad, Fp, Tp), compute_dtype)
    U_pad = U_pad.at[:out_size, :F1, :T1].set(U3.astype(compute_dtype))
    U_fused = (U_pad.reshape(n_og, G, Fp, Tp)
                    .transpose(0, 2, 1, 3)
                    .reshape(n_og, Fp, G * Tp))

    # Explicit VMEM budget (double-buffered per-step resident set), <=64 MiB.
    step_bytes = 2 * (tile_f * Fp * itemsize
                      + Tp * Lt_pad * itemsize
                      + Fp * G * Tp * itemsize
                      + G * tile_f * Lt_pad * 4)
    vmem_limit = min(max(int(step_bytes * 1.5), 32 * 1024 * 1024), 64 * 1024 * 1024)

    kernel = functools.partial(_biaffine_kernel, G=G, Tp=Tp)

    out = pl.pallas_call(
        kernel,
        out_shape=jax.ShapeDtypeStruct((B, OG_pad, Lf_pad, Lt_pad), jnp.float32),
        grid_spec=pltpu.PrefetchScalarGridSpec(
            num_scalar_prefetch=0,
            # fi innermost so the (larger) U and tT blocks stay resident across
            # consecutive steps; B outermost so megacore sharding splits batch.
            grid=(B, n_og, nf),
            in_specs=[
                pl.BlockSpec((1, tile_f, Fp), lambda b, og, fi: (b, fi, 0)),
                pl.BlockSpec((1, Tp, Lt_pad), lambda b, og, fi: (b, 0, 0)),
                pl.BlockSpec((1, Fp, G * Tp), lambda b, og, fi: (og, 0, 0)),
            ],
            out_specs=pl.BlockSpec((1, G, tile_f, Lt_pad),
                                   lambda b, og, fi: (b, og, fi, 0)),
        ),
        compiler_params=pltpu.CompilerParams(
            dimension_semantics=("parallel", "parallel", "parallel"),
            vmem_limit_bytes=vmem_limit),
    )(f_pad, tT_pad, U_fused)

    # Drop channel / sequence padding.
    out = out[:, :out_size, :from_len, :to_len]
    if channels_last:
        # PyTorch layout (B, from_len, to_len, out).  Kept optional so the
        # extra HBM pass is only paid when a consumer actually needs it.
        out = jnp.transpose(out, (0, 2, 3, 1))
    return out


def biaffine_ref(from_tensor, to_tensor, U, out_size, bias=(True, True)):
    """Pure-JAX f32 reference mirroring the PyTorch forward exactly."""
    if bias[0]:
        from_tensor = jnp.concatenate(
            [from_tensor, jnp.ones_like(from_tensor[..., :1])], axis=-1)
    if bias[1]:
        to_tensor = jnp.concatenate(
            [to_tensor, jnp.ones_like(to_tensor[..., :1])], axis=-1)
    B, from_len, _ = from_tensor.shape
    to_len = to_tensor.shape[1]
    T1 = to_tensor.shape[-1]
    affine = jnp.matmul(from_tensor, U)
    affine = affine.reshape(B, from_len * out_size, T1)
    bi = jnp.matmul(affine, jnp.swapaxes(to_tensor, 1, 2))
    bi = bi.reshape(B, from_len, out_size, to_len)
    return jnp.swapaxes(bi, 2, 3)   # (B, from_len, to_len, out)


if __name__ == "__main__":
    # Small, module-consistent shapes.
    B, from_len, to_len = 2, 8, 8
    from_size, to_size, out_size = 32, 32, 4
    bias = (True, True)

    key = jax.random.PRNGKey(0)
    k_from, k_to, k_u = jax.random.split(key, 3)

    from_tensor = jax.random.normal(k_from, (B, from_len, from_size), jnp.float32)
    to_tensor = jax.random.normal(k_to, (B, to_len, to_size), jnp.float32)

    # Deterministic kaiming_uniform_(a=sqrt(5)) equivalent:
    # bound = 1/sqrt(fan_in), fan_in = U.shape[1] = out_size * T1
    F1 = from_size + int(bias[0])
    T1 = to_size + int(bias[1])
    bound = 1.0 / math.sqrt(out_size * T1)
    U = jax.random.uniform(k_u, (F1, out_size * T1), jnp.float32,
                           minval=-bound, maxval=bound)

    ref_cl = biaffine_ref(from_tensor, to_tensor, U, out_size, bias)   # (B,f,t,out)
    ref_native = jnp.transpose(ref_cl, (0, 3, 1, 2))                   # (B,out,f,t)

    # Full-precision run, kernel-native channel-major layout (no final transpose).
    out_f32 = biaffine_forward(from_tensor, to_tensor, U, out_size, bias,
                               compute_dtype=jnp.float32, channels_last=False)
    out_f32 = jax.block_until_ready(out_f32)
    np.testing.assert_allclose(np.asarray(out_f32), np.asarray(ref_native),
                               rtol=2e-3, atol=2e-3)
    assert out_f32.shape == (B, out_size, from_len, to_len)

    # bf16 MXU-native run, PyTorch-compatible channels-last layout.
    out_bf16 = biaffine_forward(from_tensor, to_tensor, U, out_size, bias,
                                compute_dtype=jnp.bfloat16, channels_last=True)
    out_bf16 = jax.block_until_ready(out_bf16)
    np.testing.assert_allclose(np.asarray(out_bf16), np.asarray(ref_cl),
                               rtol=4e-2, atol=4e-2)
    assert out_bf16.shape == (B, from_len, to_len, out_size)

    print("KERNEL_OK")
</pallas_src>

<mosaic_0001>
module attributes {stable_mosaic.version = 11 : i64} {
  func.func @_biaffine_kernel(%arg0: i32, %arg1: i32, %arg2: i32, %arg3: memref<1x8x128xf32, #tpu.memory_space<vmem>>, %arg4: memref<1x128x128xf32, #tpu.memory_space<vmem>>, %arg5: memref<1x128x512xf32, #tpu.memory_space<vmem>>, %arg6: memref<1x4x8x128xf32, #tpu.memory_space<vmem>>) attributes {dimension_semantics = [#tpu.dimension_semantics<parallel>, #tpu.dimension_semantics<parallel>, #tpu.dimension_semantics<parallel>], iteration_bounds = array<i64: 2, 1, 1>, scalar_prefetch = 0 : i64, scratch_operands = 0 : i64, tpu.core_type = #tpu.core_type<tc>, window_params = [{transform_indices = @transform_0, window_bounds = array<i64: 1, 8, 128>}, {transform_indices = @transform_1, window_bounds = array<i64: 1, 128, 128>}, {transform_indices = @transform_2, window_bounds = array<i64: 1, 128, 512>}, {transform_indices = @transform_3, window_bounds = array<i64: 1, 4, 8, 128>}]} {
    %c0 = arith.constant 0 : index
    %c0_0 = arith.constant 0 : index
    %c0_1 = arith.constant 0 : index
    %0 = vector.load %arg3[%c0, %c0_0, %c0_1] : memref<1x8x128xf32, #tpu.memory_space<vmem>>, vector<1x8x128xf32>
    %1 = vector.shape_cast %0 : vector<1x8x128xf32> to vector<8x128xf32>
    %c0_2 = arith.constant 0 : index
    %c0_3 = arith.constant 0 : index
    %c0_4 = arith.constant 0 : index
    %2 = vector.load %arg4[%c0_2, %c0_3, %c0_4] : memref<1x128x128xf32, #tpu.memory_space<vmem>>, vector<1x128x128xf32>
    %3 = vector.shape_cast %2 : vector<1x128x128xf32> to vector<128x128xf32>
    %c0_5 = arith.constant 0 : index
    %c0_6 = arith.constant 0 : index
    %c0_7 = arith.constant 0 : index
    %4 = vector.load %arg5[%c0_5, %c0_6, %c0_7] : memref<1x128x512xf32, #tpu.memory_space<vmem>>, vector<1x128x512xf32>
    %5 = vector.shape_cast %4 : vector<1x128x512xf32> to vector<128x512xf32>
    %cst = arith.constant dense<0.000000e+00> : vector<8x512xf32>
    %6 = tpu.matmul %1, %5, %cst {dimension_numbers = #tpu.dot_dimension_numbers<[1], [0], [0], [1], [0, 0, 1, 1], [], []>} : vector<8x128xf32>, vector<128x512xf32>, vector<8x512xf32> -> vector<8x512xf32>
    %7 = vector.extract_strided_slice %6 {offsets = [0, 0], sizes = [8, 128], strides = [1, 1]} : vector<8x512xf32> to vector<8x128xf32>
    %cst_8 = arith.constant dense<0.000000e+00> : vector<8x128xf32>
    %8 = tpu.matmul %7, %3, %cst_8 {dimension_numbers = #tpu.dot_dimension_numbers<[1], [0], [0], [1], [0, 0, 1, 1], [], []>} : vector<8x128xf32>, vector<128x128xf32>, vector<8x128xf32> -> vector<8x128xf32>
    %c0_9 = arith.constant 0 : index
    %c0_10 = arith.constant 0 : index
    %c0_11 = arith.constant 0 : index
    %c0_12 = arith.constant 0 : index
    %9 = vector.load %arg6[%c0_9, %c0_10, %c0_11, %c0_12] : memref<1x4x8x128xf32, #tpu.memory_space<vmem>>, vector<1x1x8x128xf32>
    %10 = vector.shape_cast %9 : vector<1x1x8x128xf32> to vector<8x128xf32>
    %11 = vector.shape_cast %8 : vector<8x128xf32> to vector<1x1x8x128xf32>
    tpu.vector_store %arg6[%c0_9, %c0_10, %c0_11, %c0_12], %11 {strides = array<i32>} : memref<1x4x8x128xf32, #tpu.memory_space<vmem>>, vector<1x1x8x128xf32>,
    %12 = vector.extract_strided_slice %6 {offsets = [0, 128], sizes = [8, 128], strides = [1, 1]} : vector<8x512xf32> to vector<8x128xf32>
    %cst_13 = arith.constant dense<0.000000e+00> : vector<8x128xf32>
    %13 = tpu.matmul %12, %3, %cst_13 {dimension_numbers = #tpu.dot_dimension_numbers<[1], [0], [0], [1], [0, 0, 1, 1], [], []>} : vector<8x128xf32>, vector<128x128xf32>, vector<8x128xf32> -> vector<8x128xf32>
    %c0_14 = arith.constant 0 : index
    %c1 = arith.constant 1 : index
    %c0_15 = arith.constant 0 : index
    %c0_16 = arith.constant 0 : index
    %14 = vector.load %arg6[%c0_14, %c1, %c0_15, %c0_16] : memref<1x4x8x128xf32, #tpu.memory_space<vmem>>, vector<1x1x8x128xf32>
    %15 = vector.shape_cast %14 : vector<1x1x8x128xf32> to vector<8x128xf32>
    %16 = vector.shape_cast %13 : vector<8x128xf32> to vector<1x1x8x128xf32>
    tpu.vector_store %arg6[%c0_14, %c1, %c0_15, %c0_16], %16 {strides = array<i32>} : memref<1x4x8x128xf32, #tpu.memory_space<vmem>>, vector<1x1x8x128xf32>,
    %17 = vector.extract_strided_slice %6 {offsets = [0, 256], sizes = [8, 128], strides = [1, 1]} : vector<8x512xf32> to vector<8x128xf32>
    %cst_17 = arith.constant dense<0.000000e+00> : vector<8x128xf32>
    %18 = tpu.matmul %17, %3, %cst_17 {dimension_numbers = #tpu.dot_dimension_numbers<[1], [0], [0], [1], [0, 0, 1, 1], [], []>} : vector<8x128xf32>, vector<128x128xf32>, vector<8x128xf32> -> vector<8x128xf32>
    %c0_18 = arith.constant 0 : index
    %c2 = arith.constant 2 : index
    %c0_19 = arith.constant 0 : index
    %c0_20 = arith.constant 0 : index
    %19 = vector.load %arg6[%c0_18, %c2, %c0_19, %c0_20] : memref<1x4x8x128xf32, #tpu.memory_space<vmem>>, vector<1x1x8x128xf32>
    %20 = vector.shape_cast %19 : vector<1x1x8x128xf32> to vector<8x128xf32>
    %21 = vector.shape_cast %18 : vector<8x128xf32> to vector<1x1x8x128xf32>
    tpu.vector_store %arg6[%c0_18, %c2, %c0_19, %c0_20], %21 {strides = array<i32>} : memref<1x4x8x128xf32, #tpu.memory_space<vmem>>, vector<1x1x8x128xf32>,
    %22 = vector.extract_strided_slice %6 {offsets = [0, 384], sizes = [8, 128], strides = [1, 1]} : vector<8x512xf32> to vector<8x128xf32>
    %cst_21 = arith.constant dense<0.000000e+00> : vector<8x128xf32>
    %23 = tpu.matmul %22, %3, %cst_21 {dimension_numbers = #tpu.dot_dimension_numbers<[1], [0], [0], [1], [0, 0, 1, 1], [], []>} : vector<8x128xf32>, vector<128x128xf32>, vector<8x128xf32> -> vector<8x128xf32>
    %c0_22 = arith.constant 0 : index
    %c3 = arith.constant 3 : index
    %c0_23 = arith.constant 0 : index
    %c0_24 = arith.constant 0 : index
    %24 = vector.load %arg6[%c0_22, %c3, %c0_23, %c0_24] : memref<1x4x8x128xf32, #tpu.memory_space<vmem>>, vector<1x1x8x128xf32>
    %25 = vector.shape_cast %24 : vector<1x1x8x128xf32> to vector<8x128xf32>
    %26 = vector.shape_cast %23 : vector<8x128xf32> to vector<1x1x8x128xf32>
    tpu.vector_store %arg6[%c0_22, %c3, %c0_23, %c0_24], %26 {strides = array<i32>} : memref<1x4x8x128xf32, #tpu.memory_space<vmem>>, vector<1x1x8x128xf32>,
    return
  }
  func.func @transform_0(%arg0: i32, %arg1: i32, %arg2: i32) -> (i32, i32, i32) {
    %c0_i32 = arith.constant 0 : i32
    %c0_i32_0 = arith.constant 0 : i32
    return %arg0, %arg2, %c0_i32 : i32, i32, i32
  }
  func.func @transform_1(%arg0: i32, %arg1: i32, %arg2: i32) -> (i32, i32, i32) {
    %c0_i32 = arith.constant 0 : i32
    %c0_i32_0 = arith.constant 0 : i32
    %c0_i32_1 = arith.constant 0 : i32
    return %arg0, %c0_i32, %c0_i32_0 : i32, i32, i32
  }
  func.func @transform_2(%arg0: i32, %arg1: i32, %arg2: i32) -> (i32, i32, i32) {
    %c0_i32 = arith.constant 0 : i32
    %c0_i32_0 = arith.constant 0 : i32
    %c0_i32_1 = arith.constant 0 : i32
    return %arg1, %c0_i32, %c0_i32_0 : i32, i32, i32
  }
  func.func @transform_3(%arg0: i32, %arg1: i32, %arg2: i32) -> (i32, i32, i32, i32) {
    %c0_i32 = arith.constant 0 : i32
    %c0_i32_0 = arith.constant 0 : i32
    return %arg0, %arg1, %arg2, %c0_i32 : i32, i32, i32, i32
  }
}

</mosaic_0001>

<bundles_post_ra>
// kernel: tpu_custom_call.1
= control target key start
LH: loop header
LB: loop body
LE: loop exit
PB: predicated region body
PF: predicated region fallthrough
CT: control target
= control target key end

     0   :  { %s1173_s0 = inlined_call_operand.hbm [shape: f32[2,8,128], index: 0, kind: input, shape index: {}]   ;;  %s1174_s1 = inlined_call_operand.hbm [shape: f32[2,128,128], index: 1, kind: input, shape index: {}]   ;;  %s1175_s2 = inlined_call_operand.hbm [shape: f32[1,128,512], index: 2, kind: input, shape index: {}]   ;;  %s1176_s3 = inlined_call_operand.hbm [shape: f32[2,4,8,128], index: 3, kind: output, shape index: {}]  }
   0x1   :  { %1178 = sst [smem:[#allocation14_spill]] %s1173_s0 }
   0x2   :  { %1179 = sst [smem:[#allocation15_spill]] %s1175_s2 }
   0x3   :  { %8 = vsyncpa [#allocation3], 0 }
   0x4   :  { %10 = vsyncpa [#allocation3 + $0x1], 0 }
   0x5   :  { %11 = vsyncpa [#allocation6], 0 }
   0x6   :  { %13 = vsyncpa [#allocation6 + $0x1], 0 }
   0x7   :  { %14 = vsyncpa [#allocation4], 0 }
   0x8   :  { %16 = vsyncpa [#allocation4 + $0x1], 0  ;;  %s989_s12 = smov 0   ;;  %s991_s13 = smov 0  }
   0x9   :  { %s993_s14 = smov 0   ;;  %s995_s15 = smov 0  }
   0xa   :  { %s997_s16 = smov 0   ;;  %s999_s17 = smov 0  }
   0xb LB: > { %s1020_s18 = sadd.s32 4294967295, %s960_s17   ;;  %p673_p0 = scmp.ge.s32.totalorder %s960_s17, 1  ;;  %s960_s17 = sphi %s999_s17, %s22_s17   ;;  %s956_s16 = sphi %s997_s16, %s1194_s16   ;;  %s952_s15 = sphi %s995_s15, %s1193_s15   ;;  %s948_s14 = sphi %s993_s14, %s1192_s14   ;;  %s944_s13 = sphi %s991_s13, %s1191_s13   ;;  %s940_s12 = sphi %s989_s12, %s1190_s12  }
   0xc   : > { %p64_p1 = scmp.eq.s32.totalorder %s1020_s18, 0  ;;  %p156_p2 = scmp.lt.s32.totalorder %s960_s17, 3 }
   0xd   : > { %s1180_s2 = sld [smem:[#allocation15_spill]]  ;;  %s962_s23 = smov [#allocation7]  }
   0xe   : > { %p1028_p3 = pnand %p673_p0, %p156_p2  ;;  %s172_s24 = sshll.u32 %s962_s23, 4  ;;  %s173_s24 = int_to_ptr.vmem [resolvable:$true] %s172_s24 }
   0xf   : > { %p675_p6 = scmp.ge.s32.totalorder %s960_s17, 2  ;;  %s963_s25 = smov 512  }
  0x10   : > { %p706_p4 = pneg %p1028_p3  ;;  %s964_s26 = smov 32  }
  0x11   : > { %s672_s27 = sadd.s32 4294967294, %s960_s17   ;;  %s41_s28 = sadd.s32 1, %s956_s16 }
  0x12   : > { %p707_p5 = pnand %p706_p4, %p64_p1  ;;  %s50_s29 = sadd.s32 1, %s948_s14 }
  0x13   : > { %s170_s21 = sshll.u32 %s1180_s2, 4  ;;  %p43_p7 = scmp.ge.s32.totalorder %s41_s28, 2  ;;  %s171_s21 = int_to_ptr.hbm [resolvable:$true] %s170_s21 }
  0x14   : > { %709 = dma.hbm_to_vmem [thread:$0]  (!%p707_p5), %s171_s21, 8192, %s173_s24, [#allocation6], %s963_s25, %s963_s25, %s964_s26  }
  0x15   : > { %p57_p8 = scmp.ne.s32.totalorder %s948_s14, %s944_s13  ;;  %p58_p9 = scmp.eq.s32.totalorder %s960_s17, 0 }
  0x16   : > { %p63_p10 = scmp.ne.s32.totalorder %s944_s13, %s940_s12  ;;  %s1196_s28 = smov (%p43_p7, %s41_s28), 0 }
  0x17   : > { %1182 = sst [smem:[#allocation13_spill]] %s1196_s28  ;;  %p1047_p11 = por %p58_p9, %p57_p8 }
  0x18   : > { %p1053_p12 = por %p64_p1, %p63_p10  ;;  %s45_s5 = ssub.s32 %s956_s16, %s1196_s28 }
  0x19   : > { %p143_p13 = scmp.eq.s32.totalorder %s1020_s18, 1  ;;  %p48_p0 = scmp.eq.s32.totalorder %s45_s5, 0 }
  0x1a   : > { %p149_p2 = scmp.eq.s32.totalorder %s672_s27, 1  ;;  %p722_p5 = scmp.lt.s32.totalorder %s960_s17, 2 }
  0x1b   : > { %p1060_p4 = por %p143_p13, %p57_p8  ;;  %s186_s9 = sand.u32 1, %s948_s14  }
  0x1c   : > { %s1066_s7 = scalar_select %p48_p0, %s948_s14, %s50_s29  }
  0x1d   : > { %p1068_p7 = por %p149_p2, %p63_p10  ;;  %s676_s10 = sshll.u32 %s186_s9, 3 }
  0x1e   : > { %s677_s11 = sshll.u32 %s956_s16, 3  ;;  %s1187_s0 = sld [smem:[#allocation14_spill]] }
  0x1f   : > { %s190_s23 = scalar_lea.vmem [#allocation2], %s676_s10  ;;  %p1079_p8 = pnand %p722_p5, %p1047_p11 }
  0x20   : > { %s199_s24 = sshll.u32 %s190_s23, 4  ;;  %s678_s27 = sshll.u32 %s186_s9, 7  ;;  %s200_s24 = int_to_ptr.vmem [resolvable:$true] %s199_s24 }
  0x21   : > { %s694_s29 = sshll.u32 %s956_s16, 7  ;;  %s187_s5 = scalar_lea.sflag [#allocation3], %s186_s9 }
  0x22   : > { %s210_s2 = scalar_lea.vmem [#allocation5], %s678_s27  ;;  %s966_s28 = smov 8  }
  0x23   : > { %s218_s19 = sshll.u32 %s210_s2, 4  ;;  %s1095_s9 = sand.u32 (!%p1028_p3), 1, %s944_s13   ;;  %s219_s19 = int_to_ptr.vmem [resolvable:$true] %s218_s19 }
  0x24   : > { %s195_s21 = scalar_lea.hbm %s1187_s0, %s677_s11  ;;  %s206_s11 = sand.u32 1, %s960_s17  }
  0x25   : > { %s197_s25 = sshll.u32 %s195_s21, 4  ;;  %s215_s21 = scalar_lea.hbm %s1174_s1, %s694_s29  ;;  %s198_s25 = int_to_ptr.hbm [resolvable:$true] %s197_s25 }
  0x26   : > { %713 = dma.hbm_to_vmem [thread:$0]  (!%p1079_p8), %s198_s25, 128, %s200_s24, %s187_s5  }
  0x27   : > { %s216_s30 = sshll.u32 %s215_s21, 4  ;;  %s207_s23 = scalar_lea.sflag [#allocation6], %s206_s11  ;;  %s217_s30 = int_to_ptr.hbm [resolvable:$true] %s216_s30 }
  0x28   : > { %s965_s0 = smov 128   ;;  %230 = sbr.rel (%p1028_p3) target bundleno = 352 (0x160), region = 32 }
  0x29   : > { %716 = dma.hbm_to_vmem [thread:$0]  (!%p1079_p8), %s217_s30, 2048, %s219_s19, %s207_s23, %s965_s0, %s965_s0, %s966_s28  }
  0x2a   : > { %s682_s2 = sshll.u32 (!%p1028_p3), %s1095_s9, 3  ;;  %s233_s24 = scalar_lea.sflag (!%p1028_p3), [#allocation3], %s1095_s9 }
  0x2b   : > { %s1099_s25 = scalar_lea.vmem (!%p1028_p3), [#allocation2], %s682_s2 }
  0x2d   : > { %923 = dma.done.wait (%p1053_p12), %s233_s24, 128  }
  0x2e   : > { %925 = vsyncadd (%p1053_p12), %s233_s24, 4294967168  ;;  %s242_s0 = sand.u32 1, %s1020_s18   ;;  %s683_s22 = sshll.u32 %s1095_s9, 7 }
  0x2f   : > { %s243_s28 = scalar_lea.sflag [#allocation6], %s242_s0  ;;  %s1107_s26 = scalar_lea.vmem [#allocation5], %s683_s22 }
  0x30   : > { %927 = dma.done.wait (%p1053_p12), %s243_s28, 2048  }
  0x31   : > { %929 = vsyncadd (%p1053_p12), %s243_s28, 4294965248 }
  0x32   : > { %931 = dma.done.wait (%p64_p1), [#allocation6], 8192  }
  0x33   : > { %933 = vsyncadd (%p64_p1), [#allocation6], 4294959104  ;;  %v360_v0 = vld [vmem:[#allocation7 + $0x1f0] sm:$0xff]  ;;  %v361_v1 = vld [vmem:[#allocation7 + $0x1f8] sm:$0xff]  ;;  %s685_s18 = sshll.u32 %s1095_s9, 5  ;;  %s695_s4 = sshll.u32 %s952_s15, 5 }
  0x34   : > { %v356_v2 = vld [vmem:[#allocation7 + $0x1d0] sm:$0xff]  ;;  %402 = vmatpush.msra.mxu2 %v360_v0  ;;  %422 = vmatpush.msra.mxu3 %v361_v1  ;;  %v357_v3 = vld [vmem:[#allocation7 + $0x1d8] sm:$0xff]  ;;  %v358_v8 = vld [vmem:[#allocation7 + $0x1e0] sm:$0xff]  ;;  %s544_s5 = scalar_lea.hbm %s1176_s3, %s695_s4  ;;  %s279_s19 = scalar_lea.vmem [#allocation8], %s685_s18 }
  0x35   : > { %v352_v4 = vld [vmem:[#allocation7 + $0x1b0] sm:$0xff]  ;;  %v353_v5 = vld [vmem:[#allocation7 + $0x1b8] sm:$0xff]  ;;  %v359_v9 = vld [vmem:[#allocation7 + $0x1e8] sm:$0xff]  ;;  %362 = vmatpush.msra.mxu0 %v358_v8  ;;  %s545_s11 = sshll.u32 %s279_s19, 4  ;;  %s547_s10 = sshll.u32 %s544_s5, 4  ;;  %s546_s11 = int_to_ptr.vmem [resolvable:$true] %s545_s11  ;;  %s548_s10 = int_to_ptr.hbm [resolvable:$true] %s547_s10 }
  0x36   : > { %403 = vmatpush.msra.mxu2 %v356_v2  ;;  %423 = vmatpush.msra.mxu3 %v357_v3  ;;  %v348_v6 = vld [vmem:[#allocation7 + $0x190] sm:$0xff]  ;;  %v349_v7 = vld [vmem:[#allocation7 + $0x198] sm:$0xff]  ;;  %v354_v10 = vld [vmem:[#allocation7 + $0x1c0] sm:$0xff]  ;;  %s530_s20 = scalar_lea.sflag [#allocation4], %s1095_s9  ;;  %s884_s15 = sshra.s32 %s548_s10, 4  ;;  %s885_s15 = int_to_ptr.hbm [resolvable:$true] %s884_s15 }
  0x37   : > { %v355_v11 = vld [vmem:[#allocation7 + $0x1c8] sm:$0xff]  ;;  %v344_v12 = vld [vmem:[#allocation7 + $0x170] sm:$0xff]  ;;  %v345_v13 = vld [vmem:[#allocation7 + $0x178] sm:$0xff]  ;;  %382 = vmatpush.msra.mxu1 %v359_v9  ;;  %363 = vmatpush.msra.mxu0 %v354_v10  ;;  %s886_s21 = scalar_lea.hbm %s885_s15, 32  ;;  %s890_s2 = scalar_lea.hbm %s1176_s3, 64 }
  0x38   : > { %404 = vmatpush.msra.mxu2 %v352_v4  ;;  %424 = vmatpush.msra.mxu3 %v353_v5  ;;  %v350_v14 = vld [vmem:[#allocation7 + $0x1a0] sm:$0xff]  ;;  %v351_v15 = vld [vmem:[#allocation7 + $0x1a8] sm:$0xff]  ;;  %v340_v16 = vld [vmem:[#allocation7 + $0x150] sm:$0xff]  ;;  %p887_p1 = scmp.ne.s32.totalorder %s885_s15, %s886_s21  ;;  %p891_p10 = scmp.lt.s32.totalorder %s885_s15, %s1176_s3 }
  0x39   : > { %v341_v17 = vld [vmem:[#allocation7 + $0x158] sm:$0xff]  ;;  %383 = vmatpush.msra.mxu1 %v355_v11  ;;  %v346_v18 = vld [vmem:[#allocation7 + $0x180] sm:$0xff]  ;;  %v347_v19 = vld [vmem:[#allocation7 + $0x188] sm:$0xff]  ;;  %364 = vmatpush.msra.mxu0 %v350_v14  ;;  %p892_p11 = scmp.lt.s32.totalorder %s890_s2, %s886_s21 }
  0x3a   : > { %405 = vmatpush.msra.mxu2 %v348_v6  ;;  %425 = vmatpush.msra.mxu3 %v349_v7  ;;  %v336_v20 = vld [vmem:[#allocation7 + $0x130] sm:$0xff]  ;;  %v337_v21 = vld [vmem:[#allocation7 + $0x138] sm:$0xff]  ;;  %v342_v22 = vld [vmem:[#allocation7 + $0x160] sm:$0xff]  ;;  %p888_p3 = pnand %p887_p1, %p1060_p4 }
  0x3b   : > { %384 = vmatpush.msra.mxu1 %v351_v15  ;;  %v343_v23 = vld [vmem:[#allocation7 + $0x168] sm:$0xff]  ;;  %v332_v24 = vld [vmem:[#allocation7 + $0x110] sm:$0xff]  ;;  %v333_v25 = vld [vmem:[#allocation7 + $0x118] sm:$0xff]  ;;  %365 = vmatpush.msra.mxu0 %v346_v18  ;;  %p893_p12 = por %p892_p11, %p891_p10 }
  0x3c   : > { %406 = vmatpush.msra.mxu2 %v344_v12  ;;  %426 = vmatpush.msra.mxu3 %v345_v13  ;;  %v338_v26 = vld [vmem:[#allocation7 + $0x140] sm:$0xff]  ;;  %v339_v27 = vld [vmem:[#allocation7 + $0x148] sm:$0xff]  ;;  %v328_v28 = vld [vmem:[#allocation7 + $0xf0] sm:$0xff]  ;;  %p889_p9 = pneg %p888_p3 }
  0x3d   : > { %385 = vmatpush.msra.mxu1 %v347_v19  ;;  %v329_v29 = vld [vmem:[#allocation7 + $0xf8] sm:$0xff]  ;;  %366 = vmatpush.msra.mxu0 %v342_v22  ;;  %v334_v30 = vld [vmem:[#allocation7 + $0x120] sm:$0xff]  ;;  %v335_v31 = vld [vmem:[#allocation7 + $0x128] sm:$0xff] }
  0x3e   : > { %407 = vmatpush.msra.mxu2 %v340_v16  ;;  %427 = vmatpush.msra.mxu3 %v341_v17  ;;  %v324_v32 = vld [vmem:[#allocation7 + $0xd0] sm:$0xff]  ;;  %v325_v33 = vld [vmem:[#allocation7 + $0xd8] sm:$0xff]  ;;  %v330_v34 = vld [vmem:[#allocation7 + $0x100] sm:$0xff]  ;;  %p894_p13 = pnand %p893_p12, %p889_p9 }
  0x3f   : > { %386 = vmatpush.msra.mxu1 %v343_v23  ;;  %367 = vmatpush.msra.mxu0 %v338_v26  ;;  %v331_v35 = vld [vmem:[#allocation7 + $0x108] sm:$0xff]  ;;  %v320_v36 = vld [vmem:[#allocation7 + $0xb0] sm:$0xff]  ;;  %v321_v37 = vld [vmem:[#allocation7 + $0xb8] sm:$0xff] }
  0x40   : > { %408 = vmatpush.msra.mxu2 %v336_v20  ;;  %428 = vmatpush.msra.mxu3 %v337_v21  ;;  %v326_v38 = vld [vmem:[#allocation7 + $0xe0] sm:$0xff]  ;;  %v327_v39 = vld [vmem:[#allocation7 + $0xe8] sm:$0xff]  ;;  %v316_v40 = vld [vmem:[#allocation7 + $0x90] sm:$0xff] }
  0x41   : > { %387 = vmatpush.msra.mxu1 %v339_v27  ;;  %368 = vmatpush.msra.mxu0 %v334_v30  ;;  %v317_v41 = vld [vmem:[#allocation7 + $0x98] sm:$0xff]  ;;  %v322_v42 = vld [vmem:[#allocation7 + $0xc0] sm:$0xff]  ;;  %v323_v43 = vld [vmem:[#allocation7 + $0xc8] sm:$0xff] }
  0x42   : > { %409 = vmatpush.msra.mxu2 %v332_v24  ;;  %429 = vmatpush.msra.mxu3 %v333_v25  ;;  %v312_v44 = vld [vmem:[#allocation7 + $0x70] sm:$0xff]  ;;  %v313_v45 = vld [vmem:[#allocation7 + $0x78] sm:$0xff]  ;;  %v318_v46 = vld [vmem:[#allocation7 + $0xa0] sm:$0xff] }
  0x43   : > { %388 = vmatpush.msra.mxu1 %v335_v31  ;;  %369 = vmatpush.msra.mxu0 %v330_v34  ;;  %v319_v47 = vld [vmem:[#allocation7 + $0xa8] sm:$0xff]  ;;  %v308_v48 = vld [vmem:[#allocation7 + $0x50] sm:$0xff]  ;;  %v309_v49 = vld [vmem:[#allocation7 + $0x58] sm:$0xff] }
  0x44   : > { %410 = vmatpush.msra.mxu2 %v328_v28  ;;  %430 = vmatpush.msra.mxu3 %v329_v29  ;;  %v314_v50 = vld [vmem:[#allocation7 + $0x80] sm:$0xff]  ;;  %v315_v51 = vld [vmem:[#allocation7 + $0x88] sm:$0xff]  ;;  %v304_v52 = vld [vmem:[#allocation7 + $0x30] sm:$0xff] }
  0x45   : > { %389 = vmatpush.msra.mxu1 %v331_v35  ;;  %370 = vmatpush.msra.mxu0 %v326_v38  ;;  %v305_v53 = vld [vmem:[#allocation7 + $0x38] sm:$0xff]  ;;  %v310_v54 = vld [vmem:[#allocation7 + $0x60] sm:$0xff]  ;;  %v311_v55 = vld [vmem:[#allocation7 + $0x68] sm:$0xff] }
  0x46   : > { %411 = vmatpush.msra.mxu2 %v324_v32  ;;  %431 = vmatpush.msra.mxu3 %v325_v33  ;;  %v300_v56 = vld [vmem:[#allocation7 + $0x10] sm:$0xff]  ;;  %v301_v57 = vld [vmem:[#allocation7 + $0x18] sm:$0xff]  ;;  %v306_v59 = vld [vmem:[#allocation7 + $0x40] sm:$0xff] }
  0x47   : > { %390 = vmatpush.msra.mxu1 %v327_v39  ;;  %371 = vmatpush.msra.mxu0 %v322_v42  ;;  %v281_v58 = vld [vmem:[%s1099_s25] sm:$0xff]  ;;  %v307_v60 = vld [vmem:[#allocation7 + $0x48] sm:$0xff]  ;;  %v302_v62 = vld [vmem:[#allocation7 + $0x20] sm:$0xff] }
  0x48   : > { %412 = vmatpush.msra.mxu2 %v320_v36  ;;  %432 = vmatpush.msra.mxu3 %v321_v37  ;;  %v297_v61 = vld [vmem:[%s1107_s26 + $0x78] sm:$0xff]  ;;  %v303_v63 = vld [vmem:[#allocation7 + $0x28] sm:$0xff]  ;;  %v296_v0 = vld [vmem:[%s1107_s26 + $0x70] sm:$0xff] }
  0x49   : > { %391 = vmatpush.msra.mxu1 %v323_v43  ;;  %372 = vmatpush.msra.mxu0 %v318_v46  ;;  %v298_v1 = vld [vmem:[#allocation7] sm:$0xff]  ;;  %v299_v2 = vld [vmem:[#allocation7 + $0x8] sm:$0xff]  ;;  %v293_v5 = vld [vmem:[%s1107_s26 + $0x58] sm:$0xff] }
  0x4a   : > { %413 = vmatpush.msra.mxu2 %v316_v40  ;;  %433 = vmatpush.msra.mxu3 %v317_v41  ;;  %v295_v3 = vld [vmem:[%s1107_s26 + $0x68] sm:$0xff]  ;;  %v294_v4 = vld [vmem:[%s1107_s26 + $0x60] sm:$0xff]  ;;  %v292_v6 = vld [vmem:[%s1107_s26 + $0x50] sm:$0xff] }
  0x4b   : > { %392 = vmatpush.msra.mxu1 %v319_v47  ;;  %373 = vmatpush.msra.mxu0 %v314_v50  ;;  %v291_v7 = vld [vmem:[%s1107_s26 + $0x48] sm:$0xff]  ;;  %v290_v8 = vld [vmem:[%s1107_s26 + $0x40] sm:$0xff]  ;;  %v289_v9 = vld [vmem:[%s1107_s26 + $0x38] sm:$0xff] }
  0x4c   : > { %414 = vmatpush.msra.mxu2 %v312_v44  ;;  %434 = vmatpush.msra.mxu3 %v313_v45  ;;  %v288_v10 = vld [vmem:[%s1107_s26 + $0x30] sm:$0xff]  ;;  %v287_v11 = vld [vmem:[%s1107_s26 + $0x28] sm:$0xff]  ;;  %v286_v12 = vld [vmem:[%s1107_s26 + $0x20] sm:$0xff] }
  0x4d   : > { %393 = vmatpush.msra.mxu1 %v315_v51  ;;  %374 = vmatpush.msra.mxu0 %v310_v54  ;;  %v285_v13 = vld [vmem:[%s1107_s26 + $0x18] sm:$0xff]  ;;  %v284_v14 = vld [vmem:[%s1107_s26 + $0x10] sm:$0xff]  ;;  %v283_v15 = vld [vmem:[%s1107_s26 + $0x8] sm:$0xff] }
  0x4e   : > { %415 = vmatpush.msra.mxu2 %v308_v48  ;;  %435 = vmatpush.msra.mxu3 %v309_v49  ;;  %v282_v16 = vld [vmem:[%s1107_s26] sm:$0xff] }
  0x4f   : > { %394 = vmatpush.msra.mxu1 %v311_v55  ;;  %375 = vmatpush.msra.mxu0 %v306_v59 }
  0x50   : > { %416 = vmatpush.msra.mxu2 %v304_v52  ;;  %436 = vmatpush.msra.mxu3 %v305_v53 }
  0x51   : > { %395 = vmatpush.msra.mxu1 %v307_v60  ;;  %376 = vmatpush.msra.mxu0 %v302_v62 }
  0x52   : > { %417 = vmatpush.msra.mxu2 %v300_v56  ;;  %437 = vmatpush.msra.mxu3 %v301_v57 }
  0x53   : > { %418 = vmatmul.f32.vlgmr.msra.gmra.mxu2 %v281_v58  ;;  %438 = vmatmul.f32.vlgmr.msra.gmra.mxu3 %v281_v58 }
  0x54   : > { %485 = vmatpush.msrb.mxu2 %v297_v61  ;;  %507 = vmatpush.msrb.mxu3 %v297_v61 }
  0x55   : > { %396 = vmatpush.msra.mxu1 %v303_v63  ;;  %377 = vmatpush.msra.mxu0 %v298_v1 }
  0x56   : > { %486 = vmatpush.msrb.mxu2 %v296_v0  ;;  %508 = vmatpush.msrb.mxu3 %v296_v0 }
  0x57   : > { %397 = vmatpush.msra.mxu1 %v299_v2  ;;  %378 = vmatmul.f32.vlgmr.msra.gmra.mxu0 %v281_v58 }
  0x58   : > { %398 = vmatmul.f32.vlgmr.msra.gmra.mxu1 %v281_v58  ;;  %487 = vmatpush.msrb.mxu2 %v295_v3 }
  0x59   : > { %509 = vmatpush.msrb.mxu3 %v295_v3  ;;  %442 = vmatpush.msrb.mxu0 %v297_v61 }
  0x5a   : > { %463 = vmatpush.msrb.mxu1 %v297_v61  ;;  %488 = vmatpush.msrb.mxu2 %v294_v4 }
  0x5b   : > { %510 = vmatpush.msrb.mxu3 %v294_v4  ;;  %443 = vmatpush.msrb.mxu0 %v296_v0 }
  0x5c   : > { %464 = vmatpush.msrb.mxu1 %v296_v0  ;;  %489 = vmatpush.msrb.mxu2 %v293_v5 }
  0x5d   : > { %511 = vmatpush.msrb.mxu3 %v293_v5  ;;  %444 = vmatpush.msrb.mxu0 %v295_v3 }
  0x5e   : > { %465 = vmatpush.msrb.mxu1 %v295_v3  ;;  %490 = vmatpush.msrb.mxu2 %v292_v6 }
  0x5f   : > { %512 = vmatpush.msrb.mxu3 %v292_v6  ;;  %445 = vmatpush.msrb.mxu0 %v294_v4 }
  0x60   : > { %466 = vmatpush.msrb.mxu1 %v294_v4  ;;  %491 = vmatpush.msrb.mxu2 %v291_v7 }
  0x61   : > { %513 = vmatpush.msrb.mxu3 %v291_v7  ;;  %446 = vmatpush.msrb.mxu0 %v293_v5 }
  0x62   : > { %467 = vmatpush.msrb.mxu1 %v293_v5  ;;  %492 = vmatpush.msrb.mxu2 %v290_v8 }
  0x63   : > { %514 = vmatpush.msrb.mxu3 %v290_v8  ;;  %447 = vmatpush.msrb.mxu0 %v292_v6 }
  0x64   : > { %468 = vmatpush.msrb.mxu1 %v292_v6  ;;  %493 = vmatpush.msrb.mxu2 %v289_v9 }
  0x65   : > { %515 = vmatpush.msrb.mxu3 %v289_v9  ;;  %448 = vmatpush.msrb.mxu0 %v291_v7 }
  0x66   : > { %469 = vmatpush.msrb.mxu1 %v291_v7  ;;  %494 = vmatpush.msrb.mxu2 %v288_v10 }
  0x67   : > { %516 = vmatpush.msrb.mxu3 %v288_v10  ;;  %449 = vmatpush.msrb.mxu0 %v290_v8 }
  0x68   : > { %470 = vmatpush.msrb.mxu1 %v290_v8  ;;  %495 = vmatpush.msrb.mxu2 %v287_v11 }
  0x69   : > { %517 = vmatpush.msrb.mxu3 %v287_v11  ;;  %450 = vmatpush.msrb.mxu0 %v289_v9 }
  0x6a   : > { %471 = vmatpush.msrb.mxu1 %v289_v9  ;;  %496 = vmatpush.msrb.mxu2 %v286_v12 }
  0x6b   : > { %518 = vmatpush.msrb.mxu3 %v286_v12  ;;  %451 = vmatpush.msrb.mxu0 %v288_v10 }
  0x6c   : > { %472 = vmatpush.msrb.mxu1 %v288_v10  ;;  %497 = vmatpush.msrb.mxu2 %v285_v13 }
  0x6d   : > { %519 = vmatpush.msrb.mxu3 %v285_v13  ;;  %452 = vmatpush.msrb.mxu0 %v287_v11 }
  0x6e   : > { %473 = vmatpush.msrb.mxu1 %v287_v11  ;;  %498 = vmatpush.msrb.mxu2 %v284_v14 }
  0x6f   : > { %520 = vmatpush.msrb.mxu3 %v284_v14  ;;  %453 = vmatpush.msrb.mxu0 %v286_v12 }
  0x70   : > { %474 = vmatpush.msrb.mxu1 %v286_v12  ;;  %499 = vmatpush.msrb.mxu2 %v283_v15 }
  0x71   : > { %521 = vmatpush.msrb.mxu3 %v283_v15  ;;  %454 = vmatpush.msrb.mxu0 %v285_v13 }
  0x72   : > { %475 = vmatpush.msrb.mxu1 %v285_v13  ;;  %500 = vmatpush.msrb.mxu2 %v282_v16 }
  0x73   : > { %455 = vmatpush.msrb.mxu0 %v284_v14  ;;  %522 = vmatpush.msrb.mxu3 %v282_v16 }
  0x74   : > { %476 = vmatpush.msrb.mxu1 %v284_v14 }
  0x75   : > { %456 = vmatpush.msrb.mxu0 %v283_v15 }
  0x76   : > { %477 = vmatpush.msrb.mxu1 %v283_v15 }
  0x77   : > { %457 = vmatpush.msrb.mxu0 %v282_v16 }
  0x78   : > { %478 = vmatpush.msrb.mxu1 %v282_v16 }
  0xd4   : > { %v379_v19 = vpop.f32.mrf.mxu0 }
  0xd5   : > { %v399_v20 = vpop.f32.mrf.mxu1  ;;  %458 = vmatmul.f32.vlgmr.msrb.gmra.mxu0 %v379_v19 }
  0xd6   : > { %v419_v17 = vpop.f32.mrf.mxu2  ;;  %v439_v18 = vpop.f32.mrf.mxu3  ;;  %479 = vmatmul.f32.vlgmr.msrb.gmra.mxu1 %v399_v20 }
  0xd7   : > { %501 = vmatmul.f32.vlgmr.msrb.gmra.mxu2 %v419_v17  ;;  %523 = vmatmul.f32.vlgmr.msrb.gmra.mxu3 %v439_v18 }
 0x152   : > { %v459_v21 = vpop.f32.mrf.mxu0 }
 0x153   : > { %v480_v22 = vpop.f32.mrf.mxu1  ;;  %462 = vst [vmem:[%s279_s19] sm:$0xff] %v459_v21 }
 0x154   : > { %686 = vst [vmem:[%s279_s19 + $0x8] sm:$0xff] %v480_v22 }
 0x15a   : > { %v502_v23 = vpop.f32.mrf.mxu2  ;;  %v524_v24 = vpop.f32.mrf.mxu3 }
 0x15b   : > { %687 = vst [vmem:[%s279_s19 + $0x10] sm:$0xff] %v502_v23 }
 0x15c   : > { %688 = vst [vmem:[%s279_s19 + $0x18] sm:$0xff] %v524_v24 }
 0x15d   : > { %897 = shalt.err (!%p894_p13)
}
 0x15e   : > { %s967_s9 = smov 128   ;;  %s968_s0 = smov 8  }
 0x15f   : > { %704 = dma.vmem_to_hbm [thread:$0]  (%p1060_p4), %s546_s11, 512, %s548_s10, %s530_s20, %s967_s9, %s967_s9, %s968_s0  }
 0x160 PF: > { %s562_s22 = sand.u32 1, %s940_s12   ;;  %p718_p0 = pnand %p675_p6, %p1068_p7 }
 0x161   : > { %s563_s28 = scalar_lea.sflag [#allocation4], %s562_s22 }
 0x162   : > { %p719_p2 = pneg %p718_p0 }
 0x164   : > { %935 = dma.done.wait (%p719_p2), %s563_s28, 512  }
 0x165   : > { %937 = vsyncadd (%p719_p2), %s563_s28, 4294966784  ;;  %s22_s17 = sadd.s32 1, %s960_s17   ;;  %s1189_s6 = sld [smem:[#allocation13_spill]] }
 0x166   : > { %p19_p5 = scmp.ge.s32.totalorder %s22_s17, 4   ;;  %s1190_s12 = smov %s944_s13 }
 0x167   : > { %s1191_s13 = smov %s948_s14  ;;  %s1192_s14 = smov %s1066_s7 }
 0x168   : > { %s1193_s15 = smov %s956_s16  ;;  %21 = sbr.rel (!%p19_p5) target bundleno = 11 (0xb), region = 98 }
 0x16b   : > { %s1194_s16 = smov %s1189_s6 }
 0x16d   :  { %569 = vsyncpa [#allocation3], 1 }
 0x16e   :  { %571 = vsyncpa [#allocation3 + $0x1], 1 }
 0x16f   :  { %572 = vsyncpa [#allocation6], 1 }
 0x170   :  { %574 = vsyncpa [#allocation6 + $0x1], 1 }
 0x171   :  { %575 = vsyncpa [#allocation4], 1 }
 0x172   :  { %577 = vsyncpa [#allocation4 + $0x1], 1 }

</bundles_post_ra>
